<compile_context>
chip_gen: v6e
topology: v6e:2x2x1
jax: 0.10.0
libtpu: 0.0.40
codegen_flags: <defaults>
</compile_context>

<pallas_src>
import functools
import math

import jax
import jax.numpy as jnp
from jax import lax
from jax.experimental import pallas as pl
from jax.experimental.pallas import tpu as pltpu

_INV_SQRT2 = 1.0 / math.sqrt(2.0)


def _round_up(x, m):
    return ((x + m - 1) // m) * m


@functools.lru_cache(maxsize=1)
def _vmem_capacity_bytes():
    """Per-core VMEM capacity, with conservative fallbacks."""
    try:
        info = pltpu.get_tpu_info()
        cap = getattr(info, "vmem_capacity_bytes", None)
        if cap:
            return int(cap)
    except Exception:
        pass
    try:
        kind = jax.devices()[0].device_kind.lower()
    except Exception:
        kind = ""
    if "v7" in kind:
        return 64 << 20
    if any(g in kind for g in ("v6", "v5", "v4")):
        return 128 << 20
    return 64 << 20  # conservative default


def _footprint_bytes(tm, t_hid, in_p, out_p, nk, act_isz, w_isz):
    """Approximate VMEM footprint (default double-buffered blocks + scratch)."""
    fp = 2 * tm * in_p * act_isz            # x tile
    fp += 2 * in_p * t_hid * w_isz          # w1 chunk
    fp += 2 * 8 * t_hid * w_isz             # b1 chunk (sublane-padded)
    fp += 2 * t_hid * out_p * w_isz         # w2 chunk
    fp += 2 * 8 * out_p * w_isz             # b2
    fp += 2 * tm * out_p * act_isz          # out tile
    fp += tm * t_hid * 4                    # f32 intermediate h
    if nk > 1:
        fp += tm * out_p * 4                # f32 accumulator scratch
    return fp


def _select_config(n_tokens, in_p, hid_p, out_p, act_isz, w_isz, tm_req, t_hid_req):
    """Pick (tm, t_hid) respecting the VMEM budget, preferring resident weights."""
    vmem_cap = _vmem_capacity_bytes()
    budget = int(vmem_cap * 0.7)                      # headroom for Mosaic scratch
    tm_max = 512 if vmem_cap <= (64 << 20) else 1024  # v7x vs v4/v5e/v6e

    n128 = _round_up(max(n_tokens, 1), 128)
    if tm_req is not None:
        tm_cands = [max(128, min(_round_up(tm_req, 128), n128))]
    else:
        # Minimise padded rows first, then prefer the biggest tile.
        tm_cands = sorted({min(c, n128) for c in (128, 256, 512, tm_max)},
                          key=lambda c: (_round_up(n128, c), -c))

    if t_hid_req is not None:
        th = max(128, min(_round_up(t_hid_req, 128), hid_p))
        while hid_p % th:
            th += 128
        hid_cands = [th]
    else:
        # Full hidden dim (weight-resident) first, then dividing 128-multiples.
        hid_cands = [hid_p] + [c for c in (1024, 512, 256, 128)
                               if c < hid_p and hid_p % c == 0]

    for tm in tm_cands:
        for th in hid_cands:
            nk = hid_p // th
            fp = _footprint_bytes(tm, th, in_p, out_p, nk, act_isz, w_isz)
            if fp <= budget:
                return tm, th, fp, vmem_cap

    tm, th = min(tm_cands), min(hid_cands)
    nk = hid_p // th
    fp = _footprint_bytes(tm, th, in_p, out_p, nk, act_isz, w_isz)
    return tm, th, fp, vmem_cap


def _gelu_exact_f32(h):
    # Exact erf GELU (matches torch.nn.GELU default). For a faster variant use
    # the tanh approximation (EUP) when bit parity with torch is not required.
    return 0.5 * h * (1.0 + lax.erf(h * _INV_SQRT2))


def _make_mlp_kernel(nk):
    """Grid: (row tiles, out-col tiles, hidden chunks [innermost, arbitrary])."""

    def _fc1_gelu(x_ref, w1_ref, b1_ref):
        h = jnp.dot(x_ref[...], w1_ref[...], preferred_element_type=jnp.float32)
        h = h + b1_ref[...].astype(jnp.float32)
        return _gelu_exact_f32(h)

    if nk == 1:
        # Single hidden chunk (weight-resident path): no accumulator needed.
        def kernel(x_ref, w1_ref, b1_ref, w2_ref, b2_ref, o_ref):
            h = _fc1_gelu(x_ref, w1_ref, b1_ref)
            o = jnp.dot(h.astype(w2_ref.dtype), w2_ref[...],
                        preferred_element_type=jnp.float32)
            o_ref[...] = (o + b2_ref[...].astype(jnp.float32)).astype(o_ref.dtype)
        return kernel

    def kernel(x_ref, w1_ref, b1_ref, w2_ref, b2_ref, o_ref, acc_ref):
        k = pl.program_id(2)
        h = _fc1_gelu(x_ref, w1_ref, b1_ref)
        partial = jnp.dot(h.astype(w2_ref.dtype), w2_ref[...],
                          preferred_element_type=jnp.float32)

        # No zero-fill: first chunk writes, middle chunks accumulate, last
        # chunk fuses its partial + bias straight into the output store.
        @pl.when(k == 0)
        def _first():
            acc_ref[...] = partial

        @pl.when(jnp.logical_and(k > 0, k < nk - 1))
        def _middle():
            acc_ref[...] += partial

        @pl.when(k == nk - 1)
        def _last():
            o_ref[...] = (acc_ref[...] + partial
                          + b2_ref[...].astype(jnp.float32)).astype(o_ref.dtype)

    return kernel


def prepare_mlp_params(w1, b1, w2, b2):
    """Pad MLP parameters ONCE (call at init time, not per forward).

    Expects kernel layout: w1 [in, hidden], w2 [hidden, out] (i.e. transposed
    relative to torch.nn.Linear's [out, in]); biases 1-D or [1, dim].
    """
    in_f, hid = w1.shape
    hid2, out_f = w2.shape
    assert hid2 == hid, "w1/w2 hidden dims disagree"
    b1 = jnp.asarray(b1).reshape(1, -1)
    b2 = jnp.asarray(b2).reshape(1, -1)
    assert b1.shape[1] == hid and b2.shape[1] == out_f

    in_p = _round_up(in_f, 128)
    hid_p = _round_up(hid, 128)
    out_p = _round_up(out_f, 128)

    # Zero padding is an exact no-op through fc1 -> GELU(0)=0 -> fc2.
    if (in_p, hid_p) != (in_f, hid):
        w1 = jnp.pad(w1, ((0, in_p - in_f), (0, hid_p - hid)))
    if hid_p != hid:
        b1 = jnp.pad(b1, ((0, 0), (0, hid_p - hid)))
    if (hid_p, out_p) != (hid, out_f):
        w2 = jnp.pad(w2, ((0, hid_p - hid), (0, out_p - out_f)))
    if out_p != out_f:
        b2 = jnp.pad(b2, ((0, 0), (0, out_p - out_f)))

    return {"w1": w1, "b1": b1, "w2": w2, "b2": b2,
            "in_features": in_f, "out_features": out_f}


def mlp_pallas(x, params, *, tm=None, t_hid=None):
    """MLP forward: gelu(x @ w1 + b1) @ w2 + b2 for x of shape [..., in_features]."""
    w1, b1, w2, b2 = params["w1"], params["b1"], params["w2"], params["b2"]
    in_f, out_f = params["in_features"], params["out_features"]
    in_p, hid_p = w1.shape
    out_p = w2.shape[1]

    lead = x.shape[:-1]
    assert x.shape[-1] == in_f, "last dim of x must equal in_features"
    x2 = x.reshape(-1, in_f)
    n = x2.shape[0]

    act_isz = x2.dtype.itemsize
    w_isz = w1.dtype.itemsize

    tm_eff, t_hid_eff, fp, vmem_cap = _select_config(
        n, in_p, hid_p, out_p, act_isz, w_isz, tm, t_hid)

    n_p = _round_up(_round_up(n, 128), tm_eff)
    nk = hid_p // t_hid_eff
    num_row_tiles = n_p // tm_eff

    # Second "parallel" axis over output columns: only useful on 2-TC parts
    # (v7x) when there is a single row tile, so the other core is not idle.
    nj = 1
    if vmem_cap <= (64 << 20) and num_row_tiles == 1 and out_p % 256 == 0:
        nj = 2
    tn_out = out_p // nj

    # Per-call padding touches activations only (weights were padded at init).
    if (n_p, in_p) != (n, in_f):
        x2 = jnp.pad(x2, ((0, n_p - n), (0, in_p - in_f)))

    grid = (num_row_tiles, nj, nk)

    # Weights are re-streamed once per row tile only when the hidden axis is
    # chunked (nk > 1); with nk == 1 their block index is constant -> one DMA.
    w_restream = num_row_tiles if nk > 1 else 1
    cost = pl.CostEstimate(
        flops=2 * n_p * hid_p * (in_p + out_p),
        transcendentals=n_p * hid_p * nj,
        bytes_accessed=int(n_p * in_p * act_isz
                           + n_p * out_p * act_isz
                           + (w1.size + w2.size) * w_isz * w_restream
                           + (b1.size + b2.size) * w_isz),
    )

    vmem_limit = min(max(fp + (16 << 20), 48 << 20), int(vmem_cap * 0.92))
    vmem_limit = max(vmem_limit, fp + (4 << 20))

    kernel = _make_mlp_kernel(nk)
    scratch = [] if nk == 1 else [pltpu.VMEM((tm_eff, tn_out), jnp.float32)]

    out = pl.pallas_call(
        kernel,
        out_shape=jax.ShapeDtypeStruct((n_p, out_p), x2.dtype),
        grid_spec=pltpu.PrefetchScalarGridSpec(
            num_scalar_prefetch=0,
            grid=grid,
            in_specs=[
                pl.BlockSpec((tm_eff, in_p), lambda i, j, k: (i, 0)),      # x tile
                pl.BlockSpec((in_p, t_hid_eff), lambda i, j, k: (0, k)),   # w1 chunk
                pl.BlockSpec((1, t_hid_eff), lambda i, j, k: (0, k)),      # b1 chunk
                pl.BlockSpec((t_hid_eff, tn_out), lambda i, j, k: (k, j)), # w2 chunk
                pl.BlockSpec((1, tn_out), lambda i, j, k: (0, j)),         # b2
            ],
            out_specs=pl.BlockSpec((tm_eff, tn_out), lambda i, j, k: (i, j)),
            scratch_shapes=scratch,
        ),
        compiler_params=pltpu.CompilerParams(
            dimension_semantics=("parallel", "parallel", "arbitrary"),
            vmem_limit_bytes=int(vmem_limit),
        ),
        cost_estimate=cost,
    )(x2, w1, b1, w2, b2)

    return out[:n, :out_f].reshape(lead + (out_f,))


def init_mlp_params(key, in_features, hidden_features, out_features,
                    dtype=jnp.float32):
    """Deterministic c2_msra_fill-style init: kaiming_normal(fan_out), bias=0.

    Weights returned already transposed to [in, out] for the kernel layout.
    """
    k1, k2 = jax.random.split(key)
    std1 = math.sqrt(2.0 / hidden_features)
    std2 = math.sqrt(2.0 / out_features)
    w1 = (jax.random.normal(k1, (in_features, hidden_features)) * std1).astype(dtype)
    w2 = (jax.random.normal(k2, (hidden_features, out_features)) * std2).astype(dtype)
    b1 = jnp.zeros((hidden_features,), dtype)
    b2 = jnp.zeros((out_features,), dtype)
    return w1, b1, w2, b2


if __name__ == "__main__":
    key = jax.random.PRNGKey(0)
    kx, kp = jax.random.split(key)

    # Small shapes; features not 128-aligned exercise the (one-time) padding.
    batch, seq = 2, 8
    in_features, hidden_features, out_features = 64, 256, 64

    x = jax.random.normal(kx, (batch, seq, in_features), dtype=jnp.float32)
    w1, b1, w2, b2 = init_mlp_params(kp, in_features, hidden_features, out_features)

    # Pad the parameters ONCE (init time), not per forward call.
    params = prepare_mlp_params(w1, b1, w2, b2)

    # Path 1: auto config -> single hidden chunk, weights VMEM-resident.
    out = mlp_pallas(x, params)
    jax.block_until_ready(out)

    # Path 2: forced hidden-chunk streaming -> exercises the accumulator path.
    out_stream = mlp_pallas(x, params, t_hid=128)
    jax.block_until_ready(out_stream)

    # Reference in plain JAX (fc1 -> exact GELU -> fc2). Dropout(p=0) omitted.
    x2d = x.reshape(-1, in_features)
    ref = (jax.nn.gelu(x2d @ w1 + b1, approximate=False) @ w2 + b2)
    ref = ref.reshape(batch, seq, out_features)

    assert out.shape == ref.shape
    assert jnp.allclose(out, ref, atol=1e-4, rtol=1e-4), "mismatch (resident path)"
    assert jnp.allclose(out_stream, ref, atol=1e-4, rtol=1e-4), "mismatch (streamed path)"

    print("KERNEL_OK")
</pallas_src>

<mosaic_0001>
module attributes {stable_mosaic.version = 11 : i64} {
  func.func @kernel(%arg0: i32, %arg1: i32, %arg2: i32, %arg3: memref<128x128xf32, #tpu.memory_space<vmem>>, %arg4: memref<128x256xf32, #tpu.memory_space<vmem>>, %arg5: memref<1x256xf32, #tpu.memory_space<vmem>>, %arg6: memref<256x128xf32, #tpu.memory_space<vmem>>, %arg7: memref<1x128xf32, #tpu.memory_space<vmem>>, %arg8: memref<128x128xf32, #tpu.memory_space<vmem>>) attributes {dimension_semantics = [#tpu.dimension_semantics<parallel>, #tpu.dimension_semantics<parallel>, #tpu.dimension_semantics<arbitrary>], iteration_bounds = array<i64: 1, 1, 1>, scalar_prefetch = 0 : i64, scratch_operands = 0 : i64, tpu.core_type = #tpu.core_type<tc>, window_params = [{transform_indices = @transform_0, window_bounds = array<i64: 128, 128>}, {transform_indices = @transform_1, window_bounds = array<i64: 128, 256>}, {transform_indices = @transform_2, window_bounds = array<i64: 1, 256>}, {transform_indices = @transform_3, window_bounds = array<i64: 256, 128>}, {transform_indices = @transform_4, window_bounds = array<i64: 1, 128>}, {transform_indices = @transform_5, window_bounds = array<i64: 128, 128>}]} {
    %c0 = arith.constant 0 : index
    %c0_0 = arith.constant 0 : index
    %0 = vector.load %arg3[%c0, %c0_0] : memref<128x128xf32, #tpu.memory_space<vmem>>, vector<128x128xf32>
    %c0_1 = arith.constant 0 : index
    %c0_2 = arith.constant 0 : index
    %1 = vector.load %arg4[%c0_1, %c0_2] : memref<128x256xf32, #tpu.memory_space<vmem>>, vector<128x256xf32>
    %cst = arith.constant dense<0.000000e+00> : vector<128x256xf32>
    %2 = tpu.matmul %0, %1, %cst {dimension_numbers = #tpu.dot_dimension_numbers<[1], [0], [0], [1], [0, 0, 1, 1], [], []>} : vector<128x128xf32>, vector<128x256xf32>, vector<128x256xf32> -> vector<128x256xf32>
    %c0_3 = arith.constant 0 : index
    %c0_4 = arith.constant 0 : index
    %3 = vector.load %arg5[%c0_3, %c0_4] : memref<1x256xf32, #tpu.memory_space<vmem>>, vector<1x256xf32>
    %4 = vector.broadcast %3 : vector<1x256xf32> to vector<128x256xf32>
    %5 = arith.addf %2, %4 : vector<128x256xf32>
    %cst_5 = arith.constant 5.000000e-01 : f32
    %6 = vector.broadcast %cst_5 : f32 to vector<128x256xf32>
    %7 = arith.mulf %6, %5 : vector<128x256xf32>
    %cst_6 = arith.constant 0.707106769 : f32
    %8 = vector.broadcast %cst_6 : f32 to vector<128x256xf32>
    %9 = arith.mulf %5, %8 : vector<128x256xf32>
    %10 = math.erf %9 : vector<128x256xf32>
    %cst_7 = arith.constant 1.000000e+00 : f32
    %11 = vector.broadcast %cst_7 : f32 to vector<128x256xf32>
    %12 = arith.addf %11, %10 : vector<128x256xf32>
    %13 = arith.mulf %7, %12 : vector<128x256xf32>
    %c0_8 = arith.constant 0 : index
    %c0_9 = arith.constant 0 : index
    %14 = vector.load %arg6[%c0_8, %c0_9] : memref<256x128xf32, #tpu.memory_space<vmem>>, vector<256x128xf32>
    %cst_10 = arith.constant dense<0.000000e+00> : vector<128x128xf32>
    %15 = tpu.matmul %13, %14, %cst_10 {dimension_numbers = #tpu.dot_dimension_numbers<[1], [0], [0], [1], [0, 0, 1, 1], [], []>} : vector<128x256xf32>, vector<256x128xf32>, vector<128x128xf32> -> vector<128x128xf32>
    %c0_11 = arith.constant 0 : index
    %c0_12 = arith.constant 0 : index
    %16 = vector.load %arg7[%c0_11, %c0_12] : memref<1x128xf32, #tpu.memory_space<vmem>>, vector<1x128xf32>
    %17 = vector.broadcast %16 : vector<1x128xf32> to vector<128x128xf32>
    %18 = arith.addf %15, %17 : vector<128x128xf32>
    %c0_13 = arith.constant 0 : index
    %c0_14 = arith.constant 0 : index
    %19 = vector.load %arg8[%c0_13, %c0_14] : memref<128x128xf32, #tpu.memory_space<vmem>>, vector<128x128xf32>
    tpu.vector_store %arg8[%c0_13, %c0_14], %18 {strides = array<i32>} : memref<128x128xf32, #tpu.memory_space<vmem>>, vector<128x128xf32>,
    return
  }
  func.func @transform_0(%arg0: i32, %arg1: i32, %arg2: i32) -> (i32, i32) {
    %c0_i32 = arith.constant 0 : i32
    %c0_i32_0 = arith.constant 0 : i32
    return %arg0, %c0_i32 : i32, i32
  }
  func.func @transform_1(%arg0: i32, %arg1: i32, %arg2: i32) -> (i32, i32) {
    %c0_i32 = arith.constant 0 : i32
    %c0_i32_0 = arith.constant 0 : i32
    return %c0_i32, %arg2 : i32, i32
  }
  func.func @transform_2(%arg0: i32, %arg1: i32, %arg2: i32) -> (i32, i32) {
    %c0_i32 = arith.constant 0 : i32
    %c0_i32_0 = arith.constant 0 : i32
    return %c0_i32, %arg2 : i32, i32
  }
  func.func @transform_3(%arg0: i32, %arg1: i32, %arg2: i32) -> (i32, i32) {
    %c0_i32 = arith.constant 0 : i32
    return %arg2, %arg1 : i32, i32
  }
  func.func @transform_4(%arg0: i32, %arg1: i32, %arg2: i32) -> (i32, i32) {
    %c0_i32 = arith.constant 0 : i32
    %c0_i32_0 = arith.constant 0 : i32
    return %c0_i32, %arg1 : i32, i32
  }
  func.func @transform_5(%arg0: i32, %arg1: i32, %arg2: i32) -> (i32, i32) {
    %c0_i32 = arith.constant 0 : i32
    return %arg0, %arg1 : i32, i32
  }
}

</mosaic_0001>

<bundles_post_ra>
// kernel: tpu_custom_call.1
= control target key start
LH: loop header
LB: loop body
LE: loop exit
PB: predicated region body
PF: predicated region fallthrough
CT: control target
= control target key end

     0   :  { %10 = vsyncpa [#allocation3], 0  ;;  %s1125_s0 = inlined_call_operand.hbm [shape: f32[128,128], index: 0, kind: input, shape index: {}]   ;;  %s1126_s1 = inlined_call_operand.hbm [shape: f32[128,256], index: 1, kind: input, shape index: {}]   ;;  %s1127_s2 = inlined_call_operand.vmem [shape: f32[1,256], index: 2, kind: input, shape index: {}]   ;;  %s1128_s3 = inlined_call_operand.hbm [shape: f32[256,128], index: 3, kind: input, shape index: {}]   ;;  %s1129_s4 = inlined_call_operand.vmem [shape: f32[1,128], index: 4, kind: input, shape index: {}]   ;;  %s1130_s5 = inlined_call_operand.hbm [shape: f32[128,128], index: 5, kind: output, shape index: {}]  }
   0x1   :  { %11 = vsyncpa [#allocation6], 0 }
   0x2   :  { %12 = vsyncpa [#allocation4], 0  ;;  %s901_s18 = smov [#allocation5]  }
   0x3   :  { %s30_s19 = sshll.u32 %s901_s18, 4  ;;  %s31_s19 = int_to_ptr.vmem [resolvable:$true] %s30_s19 }
   0x4   :  { %s823_s20 = scalar_lea.vmem %s31_s19, 4096  ;;  %p828_p1 = scmp.lt.s32.totalorder %s31_s19, %s31_s19 }
   0x5   :  { %p824_p0 = scmp.ne.s32.totalorder %s31_s19, %s823_s20  ;;  %p829_p2 = scmp.lt.s32.totalorder %s823_s20, %s823_s20 }
   0x7   :  { %p830_p3 = por %p829_p2, %p828_p1 }
   0x9   :  { %p831_p4 = pnand %p830_p3, %p824_p0 }
   0xb   :  { %834 = shalt.err (!%p831_p4)
}
   0xc   :  { %s902_s21 = smov 256   ;;  %s903_s22 = smov 16  }
   0xd   :  { %36 = dma.hbm_to_vmem [thread:$0]  %s1126_s1, 4096, %s31_s19, [#allocation6], %s902_s21, %s902_s21, %s903_s22  }
   0xe   :  { %s904_s25 = smov [#allocation2]  }
   0xf   :  { %s18_s26 = sshll.u32 %s904_s25, 4  ;;  %s19_s26 = int_to_ptr.vmem [resolvable:$true] %s18_s26 }
  0x10   :  { %s843_s27 = scalar_lea.vmem %s19_s26, 2048  ;;  %p848_p6 = scmp.lt.s32.totalorder %s19_s26, %s19_s26 }
  0x11   :  { %p844_p5 = scmp.ne.s32.totalorder %s19_s26, %s843_s27  ;;  %p849_p7 = scmp.lt.s32.totalorder %s843_s27, %s843_s27 }
  0x13   :  { %p850_p8 = por %p849_p7, %p848_p6 }
  0x15   :  { %p851_p9 = pnand %p850_p8, %p844_p5 }
  0x17   :  { %854 = shalt.err (!%p851_p9)
}
  0x18   :  { %s905_s28 = smov 128   ;;  %s906_s29 = smov 8  }
  0x19   :  { %24 = dma.hbm_to_vmem [thread:$0]  %s1125_s0, 2048, %s19_s26, [#allocation3], %s905_s28, %s905_s28, %s906_s29  }
  0x1a   :  { %s907_s1 = smov [#allocation7]  }
  0x1b   :  { %s44_s7 = sshll.u32 %s907_s1, 4  ;;  %s45_s7 = int_to_ptr.vmem [resolvable:$true] %s44_s7 }
  0x1c   :  { %s863_s8 = scalar_lea.vmem %s45_s7, 4096  ;;  %p868_p11 = scmp.lt.s32.totalorder %s45_s7, %s45_s7 }
  0x1d   :  { %p864_p10 = scmp.ne.s32.totalorder %s45_s7, %s863_s8  ;;  %p869_p12 = scmp.lt.s32.totalorder %s863_s8, %s863_s8 }
  0x1f   :  { %p870_p13 = por %p869_p12, %p868_p11 }
  0x21   :  { %p871_p0 = pnand %p870_p13, %p864_p10 }
  0x23   :  { %874 = shalt.err (!%p871_p0)
}
  0x24   :  { %50 = dma.hbm_to_vmem [thread:$0]  %s1128_s3, 4096, %s45_s7, [#allocation6], %s905_s28, %s905_s28, %s906_s29  }
  0x25   :  { %895 = dma.done.wait [#allocation3], 2048  }
  0x26   :  { %896 = vsyncadd [#allocation3], 4294965248 }
  0x27   :  { %897 = dma.done.wait [#allocation6], 8192  }
  0x28   :  { %898 = vsyncadd [#allocation6], 4294959104  ;;  %v908_v0 = vmov 0.0   ;;  %v109_v1 = vld [vmem:[#allocation5 + $0xf8] sm:$0xff]  ;;  %v108_v2 = vld [vmem:[#allocation5 + $0xf0] sm:$0xff] }
  0x29   :  { %186 = vmatprep.mubr.f32.mxu0 %v908_v0  ;;  %v107_v3 = vld [vmem:[#allocation5 + $0xe8] sm:$0xff]  ;;  %122 = vmatprep.subr.mxu0 %v109_v1  ;;  %v106_v4 = vld [vmem:[#allocation5 + $0xe0] sm:$0xff]  ;;  %v105_v5 = vld [vmem:[#allocation5 + $0xd8] sm:$0xff] }
  0x2a   :  { %123 = vmatpush1.msra.mxu0 %v108_v2  ;;  %v104_v6 = vld [vmem:[#allocation5 + $0xd0] sm:$0xff]  ;;  %v103_v7 = vld [vmem:[#allocation5 + $0xc8] sm:$0xff]  ;;  %v102_v8 = vld [vmem:[#allocation5 + $0xc0] sm:$0xff] }
  0x2b   :  { %124 = vmatprep.subr.mxu0 %v107_v3  ;;  %v101_v9 = vld [vmem:[#allocation5 + $0xb8] sm:$0xff]  ;;  %v100_v10 = vld [vmem:[#allocation5 + $0xb0] sm:$0xff]  ;;  %v99_v11 = vld [vmem:[#allocation5 + $0xa8] sm:$0xff] }
  0x2c   :  { %125 = vmatpush1.msra.mxu0 %v106_v4  ;;  %v98_v12 = vld [vmem:[#allocation5 + $0xa0] sm:$0xff]  ;;  %v97_v13 = vld [vmem:[#allocation5 + $0x98] sm:$0xff]  ;;  %v96_v14 = vld [vmem:[#allocation5 + $0x90] sm:$0xff] }
  0x2d   :  { %126 = vmatprep.subr.mxu0 %v105_v5  ;;  %v95_v15 = vld [vmem:[#allocation5 + $0x88] sm:$0xff]  ;;  %v94_v16 = vld [vmem:[#allocation5 + $0x80] sm:$0xff]  ;;  %v93_v17 = vld [vmem:[#allocation5 + $0x78] sm:$0xff] }
  0x2e   :  { %127 = vmatpush1.msra.mxu0 %v104_v6  ;;  %v92_v18 = vld [vmem:[#allocation5 + $0x70] sm:$0xff]  ;;  %v91_v19 = vld [vmem:[#allocation5 + $0x68] sm:$0xff]  ;;  %v474_v20 = vld [vmem:[#allocation7 + $0xf8] sm:$0xff] }
  0x2f   :  { %128 = vmatprep.subr.mxu0 %v103_v7  ;;  %v458_v21 = vld [vmem:[#allocation7 + $0x78] sm:$0xff]  ;;  %v473_v22 = vld [vmem:[#allocation7 + $0xf0] sm:$0xff]  ;;  %v90_v23 = vld [vmem:[#allocation5 + $0x60] sm:$0xff]  ;;  %662 = vmatprep.subr.mxu1 %v474_v20 }
  0x30   :  { %129 = vmatpush1.msra.mxu0 %v102_v8  ;;  %v457_v24 = vld [vmem:[#allocation7 + $0x70] sm:$0xff]  ;;  %v89_v25 = vld [vmem:[#allocation5 + $0x58] sm:$0xff]  ;;  %663 = vmatpush3.msra.mxu1 %v458_v21  ;;  %v472_v26 = vld [vmem:[#allocation7 + $0xe8] sm:$0xff] }
  0x31   :  { %130 = vmatprep.subr.mxu0 %v101_v9  ;;  %v88_v27 = vld [vmem:[#allocation5 + $0x50] sm:$0xff]  ;;  %664 = vmatprep.subr.mxu1 %v473_v22  ;;  %v456_v28 = vld [vmem:[#allocation7 + $0x68] sm:$0xff]  ;;  %v86_v30 = vld [vmem:[#allocation5 + $0x40] sm:$0xff] }
  0x32   :  { %131 = vmatpush1.msra.mxu0 %v100_v10  ;;  %v87_v29 = vld [vmem:[#allocation5 + $0x48] sm:$0xff]  ;;  %665 = vmatpush3.msra.mxu1 %v457_v24  ;;  %v85_v31 = vld [vmem:[#allocation5 + $0x38] sm:$0xff]  ;;  %v84_v32 = vld [vmem:[#allocation5 + $0x30] sm:$0xff] }
  0x33   :  { %132 = vmatprep.subr.mxu0 %v99_v11  ;;  %666 = vmatprep.subr.mxu1 %v472_v26  ;;  %v83_v33 = vld [vmem:[#allocation5 + $0x28] sm:$0xff]  ;;  %v82_v34 = vld [vmem:[#allocation5 + $0x20] sm:$0xff]  ;;  %v81_v35 = vld [vmem:[#allocation5 + $0x18] sm:$0xff] }
  0x34   :  { %133 = vmatpush1.msra.mxu0 %v98_v12  ;;  %667 = vmatpush3.msra.mxu1 %v456_v28  ;;  %v80_v36 = vld [vmem:[#allocation5 + $0x10] sm:$0xff]  ;;  %v79_v37 = vld [vmem:[#allocation5 + $0x8] sm:$0xff]  ;;  %v78_v38 = vld [vmem:[#allocation5] sm:$0xff] }
  0x35   :  { %134 = vmatprep.subr.mxu0 %v97_v13  ;;  %v62_v39 = vld [vmem:[#allocation2] sm:$0xff]  ;;  %v63_v40 = vld [vmem:[#allocation2 + $0x8] sm:$0xff]  ;;  %v64_v41 = vld [vmem:[#allocation2 + $0x10] sm:$0xff] }
  0x36   :  { %135 = vmatpush1.msra.mxu0 %v96_v14  ;;  %v65_v42 = vld [vmem:[#allocation2 + $0x18] sm:$0xff]  ;;  %v66_v43 = vld [vmem:[#allocation2 + $0x20] sm:$0xff]  ;;  %v67_v44 = vld [vmem:[#allocation2 + $0x28] sm:$0xff] }
  0x37   :  { %136 = vmatprep.subr.mxu0 %v95_v15  ;;  %v68_v45 = vld [vmem:[#allocation2 + $0x30] sm:$0xff]  ;;  %v69_v46 = vld [vmem:[#allocation2 + $0x38] sm:$0xff]  ;;  %v70_v47 = vld [vmem:[#allocation2 + $0x40] sm:$0xff] }
  0x38   :  { %137 = vmatpush1.msra.mxu0 %v94_v16  ;;  %v71_v48 = vld [vmem:[#allocation2 + $0x48] sm:$0xff]  ;;  %v72_v49 = vld [vmem:[#allocation2 + $0x50] sm:$0xff]  ;;  %v73_v50 = vld [vmem:[#allocation2 + $0x58] sm:$0xff] }
  0x39   :  { %138 = vmatprep.subr.mxu0 %v93_v17  ;;  %v74_v51 = vld [vmem:[#allocation2 + $0x60] sm:$0xff]  ;;  %v75_v52 = vld [vmem:[#allocation2 + $0x68] sm:$0xff]  ;;  %v76_v53 = vld [vmem:[#allocation2 + $0x70] sm:$0xff]  ;;  %v112_v17 = vlaneseq }
  0x3a   :  { %139 = vmatpush1.msra.mxu0 %v92_v18  ;;  %v77_v54 = vld [vmem:[#allocation2 + $0x78] sm:$0xff]  ;;  %v471_v55 = vld [vmem:[#allocation7 + $0xe0] sm:$0xff]  ;;  %v469_v59 = vld [vmem:[#allocation7 + $0xd0] sm:$0xff] }
  0x3b   :  { %140 = vmatprep.subr.mxu0 %v91_v19  ;;  %668 = vmatprep.subr.mxu1 %v471_v55  ;;  %v455_v56 = vld [vmem:[#allocation7 + $0x60] sm:$0xff]  ;;  %v470_v57 = vld [vmem:[#allocation7 + $0xd8] sm:$0xff]  ;;  %v453_v60 = vld [vmem:[#allocation7 + $0x50] sm:$0xff]  ;;  %v113_v18 = vshrl.u32 %v112_v17, 7 }
  0x3c   :  { %141 = vmatpush1.msra.mxu0 %v90_v23  ;;  %669 = vmatpush3.msra.mxu1 %v455_v56  ;;  %v454_v58 = vld [vmem:[#allocation7 + $0x58] sm:$0xff]  ;;  %v468_v61 = vld [vmem:[#allocation7 + $0xc8] sm:$0xff]  ;;  %v467_v63 = vld [vmem:[#allocation7 + $0xc0] sm:$0xff] }
  0x3d   :  { %142 = vmatprep.subr.mxu0 %v89_v25  ;;  %670 = vmatprep.subr.mxu1 %v470_v57  ;;  %v452_v62 = vld [vmem:[#allocation7 + $0x48] sm:$0xff]  ;;  %v466_v1 = vld [vmem:[#allocation7 + $0xb8] sm:$0xff]  ;;  %v465_v3 = vld [vmem:[#allocation7 + $0xb0] sm:$0xff]  ;;  %v114_v19 = vsub.s32 0, %v113_v18  ;;  %v118_v21 = vsub.s32 1, %v113_v18 }
  0x3e   :  { %143 = vmatpush1.msra.mxu0 %v88_v27  ;;  %671 = vmatpush3.msra.mxu1 %v454_v58  ;;  %v450_v2 = vld [vmem:[#allocation7 + $0x38] sm:$0xff]  ;;  %v449_v4 = vld [vmem:[#allocation7 + $0x30] sm:$0xff]  ;;  %v464_v5 = vld [vmem:[#allocation7 + $0xa8] sm:$0xff] }
  0x3f   :  { %144 = vmatprep.subr.mxu0 %v87_v29  ;;  %672 = vmatprep.subr.mxu1 %v469_v59  ;;  %v448_v6 = vld [vmem:[#allocation7 + $0x28] sm:$0xff]  ;;  %v463_v7 = vld [vmem:[#allocation7 + $0xa0] sm:$0xff]  ;;  %v462_v9 = vld [vmem:[#allocation7 + $0x98] sm:$0xff] }
  0x40   :  { %145 = vmatpush1.msra.mxu0 %v86_v30  ;;  %673 = vmatpush3.msra.mxu1 %v453_v60  ;;  %v447_v8 = vld [vmem:[#allocation7 + $0x20] sm:$0xff]  ;;  %v446_v10 = vld [vmem:[#allocation7 + $0x18] sm:$0xff]  ;;  %v461_v11 = vld [vmem:[#allocation7 + $0x90] sm:$0xff] }
  0x41   :  { %146 = vmatprep.subr.mxu0 %v85_v31  ;;  %674 = vmatprep.subr.mxu1 %v468_v61  ;;  %v445_v12 = vld [vmem:[#allocation7 + $0x10] sm:$0xff]  ;;  %v460_v13 = vld [vmem:[#allocation7 + $0x88] sm:$0xff]  ;;  %v459_v15 = vld [vmem:[#allocation7 + $0x80] sm:$0xff] }
  0x42   :  { %147 = vmatpush1.msra.mxu0 %v84_v32  ;;  %675 = vmatpush3.msra.mxu1 %v452_v62  ;;  %v444_v14 = vld [vmem:[#allocation7 + $0x8] sm:$0xff]  ;;  %v443_v16 = vld [vmem:[#allocation7] sm:$0xff] }
  0x43   :  { %148 = vmatprep.subr.mxu0 %v83_v33  ;;  %676 = vmatprep.subr.mxu1 %v467_v63  ;;  %v110_v20 = vld [vmem:[%s1127_s2] sm:$0x3] }
  0x44   :  { %149 = vmatpush1.msra.mxu0 %v82_v34  ;;  %v974_v22 = vrot.slane %v110_v20, %v114_v19  ;;  %v976_v23 = vrot.slane %v110_v20, %v118_v21 }
  0x45   :  { %150 = vmatprep.subr.mxu0 %v81_v35 }
  0x46   :  { %151 = vmatpush1.msra.mxu0 %v80_v36 }
  0x47   :  { %152 = vmatprep.subr.mxu0 %v79_v37 }
  0x48   :  { %153 = vmatpush1.msra.mxu0 %v78_v38 }
  0x49   :  { %187 = vmatmul.mubr.f32.vlgmr.msra.gmra.mxu0 %v62_v39 }
  0x4a   :  { %192 = vmatprep.mubr.f32.mxu0 %v908_v0 }
  0x4d   :  { %193 = vmatmul.mubr.f32.gmra.mxu0 %v63_v40 }
  0x4e   :  { %198 = vmatprep.mubr.f32.mxu0 %v908_v0 }
  0x51   :  { %199 = vmatmul.mubr.f32.gmra.mxu0 %v64_v41 }
  0x52   :  { %204 = vmatprep.mubr.f32.mxu0 %v908_v0 }
  0x55   :  { %205 = vmatmul.mubr.f32.gmra.mxu0 %v65_v42 }
  0x56   :  { %210 = vmatprep.mubr.f32.mxu0 %v908_v0 }
  0x59   :  { %211 = vmatmul.mubr.f32.gmra.mxu0 %v66_v43 }
  0x5a   :  { %216 = vmatprep.mubr.f32.mxu0 %v908_v0 }
  0x5d   :  { %217 = vmatmul.mubr.f32.gmra.mxu0 %v67_v44 }
  0x5e   :  { %222 = vmatprep.mubr.f32.mxu0 %v908_v0 }
  0x61   :  { %223 = vmatmul.mubr.f32.gmra.mxu0 %v68_v45 }
  0x62   :  { %228 = vmatprep.mubr.f32.mxu0 %v908_v0 }
  0x65   :  { %229 = vmatmul.mubr.f32.gmra.mxu0 %v69_v46 }
  0x66   :  { %234 = vmatprep.mubr.f32.mxu0 %v908_v0 }
  0x69   :  { %235 = vmatmul.mubr.f32.gmra.mxu0 %v70_v47 }
  0x6a   :  { %240 = vmatprep.mubr.f32.mxu0 %v908_v0 }
  0x6d   :  { %241 = vmatmul.mubr.f32.gmra.mxu0 %v71_v48 }
  0x6e   :  { %246 = vmatprep.mubr.f32.mxu0 %v908_v0 }
  0x71   :  { %247 = vmatmul.mubr.f32.gmra.mxu0 %v72_v49 }
  0x72   :  { %252 = vmatprep.mubr.f32.mxu0 %v908_v0 }
  0x75   :  { %253 = vmatmul.mubr.f32.gmra.mxu0 %v73_v50 }
  0x76   :  { %258 = vmatprep.mubr.f32.mxu0 %v908_v0 }
  0x79   :  { %259 = vmatmul.mubr.f32.gmra.mxu0 %v74_v51 }
  0x7a   :  { %264 = vmatprep.mubr.f32.mxu0 %v908_v0 }
  0x7d   :  { %265 = vmatmul.mubr.f32.gmra.mxu0 %v75_v52 }
  0x7e   :  { %270 = vmatprep.mubr.f32.mxu0 %v908_v0 }
  0x81   :  { %271 = vmatmul.mubr.f32.gmra.mxu0 %v76_v53 }
  0x82   :  { %276 = vmatprep.mubr.f32.mxu0 %v908_v0  ;;  %v451_v0 = vld [vmem:[#allocation7 + $0x40] sm:$0xff] }
  0x83   :  { %677 = vmatpush3.msra.mxu1 %v451_v0 }
  0x84   :  { %678 = vmatprep.subr.mxu1 %v466_v1 }
  0x85   :  { %277 = vmatmul.mubr.f32.gmra.mxu0 %v77_v54  ;;  %679 = vmatpush3.msra.mxu1 %v450_v2 }
  0x86   :  { %680 = vmatprep.subr.mxu1 %v465_v3 }
  0x87   :  { %681 = vmatpush3.msra.mxu1 %v449_v4 }
  0x88   :  { %682 = vmatprep.subr.mxu1 %v464_v5 }
  0x89   :  { %683 = vmatpush3.msra.mxu1 %v448_v6 }
  0x8a   :  { %684 = vmatprep.subr.mxu1 %v463_v7 }
  0x8b   :  { %685 = vmatpush3.msra.mxu1 %v447_v8 }
  0x8c   :  { %686 = vmatprep.subr.mxu1 %v462_v9 }
  0x8d   :  { %687 = vmatpush3.msra.mxu1 %v446_v10 }
  0x8e   :  { %688 = vmatprep.subr.mxu1 %v461_v11 }
  0x8f   :  { %689 = vmatpush3.msra.mxu1 %v445_v12 }
  0x90   :  { %690 = vmatprep.subr.mxu1 %v460_v13 }
  0x91   :  { %691 = vmatpush3.msra.mxu1 %v444_v14 }
  0x92   :  { %692 = vmatprep.subr.mxu1 %v459_v15 }
  0x93   :  { %693 = vmatpush3.msra.mxu1 %v443_v16 }
 0x109   :  { %v188_v24 = vpop.f32.mrf.mxu0 }
 0x10a   :  { %v189_v25 = vadd.f32 %v188_v24, %v974_v22 }
 0x10b   :  { %v190_v26 = vpop.f32.mrf.mxu0 }
 0x10c   :  { %v315_v27 = vmul.f32 0.70710677, %v189_v25  ;;  %v191_v28 = vadd.f32 %v190_v26, %v976_v23  ;;  %v283_v60 = vmul.f32 0.5, %v189_v25 }
 0x10d   :  { %v194_v29 = vpop.f32.mrf.mxu0 }
 0x10e   :  { %751 = verf.f32 %v315_v27  ;;  %v316_v30 = vmul.f32 0.70710677, %v191_v28  ;;  %v195_v31 = vadd.f32 %v194_v29, %v974_v22  ;;  %v284_v62 = vmul.f32 0.5, %v191_v28 }
 0x10f   :  { %v196_v32 = vpop.f32.mrf.mxu0 }
 0x110   :  { %753 = verf.f32 %v316_v30  ;;  %v317_v33 = vmul.f32 0.70710677, %v195_v31  ;;  %v197_v34 = vadd.f32 %v196_v32, %v976_v23  ;;  %v285_v13 = vmul.f32 0.5, %v195_v31 }
 0x111   :  { %v200_v35 = vpop.f32.mrf.mxu0 }
 0x112   :  { %755 = verf.f32 %v317_v33  ;;  %v318_v36 = vmul.f32 0.70710677, %v197_v34  ;;  %v201_v37 = vadd.f32 %v200_v35, %v974_v22  ;;  %v286_v10 = vmul.f32 0.5, %v197_v34 }
 0x113   :  { %v202_v38 = vpop.f32.mrf.mxu0 }
 0x114   :  { %757 = verf.f32 %v318_v36  ;;  %v319_v39 = vmul.f32 0.70710677, %v201_v37  ;;  %v203_v40 = vadd.f32 %v202_v38, %v976_v23  ;;  %v287_v26 = vmul.f32 0.5, %v201_v37 }
 0x115   :  { %v206_v41 = vpop.f32.mrf.mxu0 }
 0x116   :  { %759 = verf.f32 %v319_v39  ;;  %v320_v42 = vmul.f32 0.70710677, %v203_v40  ;;  %v985_v43 = vadd.f32 %v206_v41, %v974_v22  ;;  %v288_v27 = vmul.f32 0.5, %v203_v40 }
 0x117   :  { %v208_v44 = vpop.f32.mrf.mxu0 }
 0x118   :  { %761 = verf.f32 %v320_v42  ;;  %v321_v45 = vmul.f32 0.70710677, %v985_v43  ;;  %v989_v46 = vadd.f32 %v208_v44, %v976_v23  ;;  %v289_v44 = vmul.f32 0.5, %v985_v43 }
 0x119   :  { %v212_v47 = vpop.f32.mrf.mxu0 }
 0x11a   :  { %763 = verf.f32 %v321_v45  ;;  %v322_v48 = vmul.f32 0.70710677, %v989_v46  ;;  %v993_v49 = vadd.f32 %v212_v47, %v974_v22  ;;  %v290_v40 = vmul.f32 0.5, %v989_v46 }
 0x11b   :  { %v752_v50 = vpop.eup %751  ;;  %v214_v51 = vpop.f32.mrf.mxu0 }
 0x11c   :  { %765 = verf.f32 %v322_v48  ;;  %v323_v52 = vmul.f32 0.70710677, %v993_v49  ;;  %v997_v53 = vadd.f32 %v214_v51, %v976_v23  ;;  %v379_v56 = vadd.f32 1.0, %v752_v50 }
 0x11d   :  { %v754_v54 = vpop.eup %753  ;;  %v218_v55 = vpop.f32.mrf.mxu0  ;;  %v291_v43 = vmul.f32 0.5, %v993_v49 }
 0x11e   :  { %767 = verf.f32 %v323_v52  ;;  %v324_v57 = vmul.f32 0.70710677, %v997_v53  ;;  %v1001_v58 = vadd.f32 %v218_v55, %v974_v22  ;;  %v380_v63 = vadd.f32 1.0, %v754_v54 }
 0x11f   :  { %v756_v59 = vpop.eup %755  ;;  %v220_v61 = vpop.f32.mrf.mxu0  ;;  %v411_v5 = vmul.f32 %v379_v56, %v283_v60 }
 0x120   :  { %769 = verf.f32 %v324_v57  ;;  %v325_v0 = vmul.f32 0.70710677, %v1001_v58  ;;  %v1005_v1 = vadd.f32 %v220_v61, %v976_v23  ;;  %v412_v4 = vmul.f32 %v380_v63, %v284_v62 }
 0x121   :  { %v758_v2 = vpop.eup %757  ;;  %v224_v3 = vpop.f32.mrf.mxu0  ;;  %v381_v8 = vadd.f32 1.0, %v756_v59  ;;  %v292_v57 = vmul.f32 0.5, %v997_v53 }
 0x122   :  { %771 = verf.f32 %v325_v0  ;;  %v326_v6 = vmul.f32 0.70710677, %v1005_v1  ;;  %v1009_v7 = vadd.f32 %v224_v3, %v974_v22  ;;  %546 = vmatprep.mubr.f32.mxu1 %v412_v4  ;;  %v382_v12 = vadd.f32 1.0, %v758_v2 }
 0x123   :  { %v760_v9 = vpop.eup %759  ;;  %v226_v11 = vpop.f32.mrf.mxu0  ;;  %547 = vmatmul.mubr.f32.vlgmr.msra.gmra.mxu1 %v411_v5  ;;  %v413_v24 = vmul.f32 %v381_v8, %v285_v13 }
 0x124   :  { %773 = verf.f32 %v326_v6  ;;  %v327_v14 = vmul.f32 0.70710677, %v1009_v7  ;;  %v1013_v15 = vadd.f32 %v226_v11, %v976_v23  ;;  %v414_v18 = vmul.f32 %v382_v12, %v286_v10 }
 0x125   :  { %v762_v16 = vpop.eup %761  ;;  %v230_v17 = vpop.f32.mrf.mxu0  ;;  %v383_v19 = vadd.f32 1.0, %v760_v9  ;;  %v294_v6 = vmul.f32 0.5, %v1005_v1  ;;  %v293_v10 = vmul.f32 0.5, %v1001_v58  ;;  %v295_v58 = vmul.f32 0.5, %v1009_v7 }
 0x126   :  { %775 = verf.f32 %v327_v14  ;;  %v328_v20 = vmul.f32 0.70710677, %v1013_v15  ;;  %v1017_v21 = vadd.f32 %v230_v17, %v974_v22  ;;  %551 = vmatprep.mubr.f32.mxu1 %v414_v18  ;;  %v384_v29 = vadd.f32 1.0, %v762_v16 }
 0x127   :  { %v764_v25 = vpop.eup %763  ;;  %v232_v28 = vpop.f32.mrf.mxu0  ;;  %552 = vmatmul.mubr.f32.gmra.mxu1 %v413_v24  ;;  %v415_v35 = vmul.f32 %v383_v19, %v287_v26  ;;  %v296_v24 = vmul.f32 0.5, %v1013_v15 }
 0x128   :  { %777 = verf.f32 %v328_v20  ;;  %v329_v30 = vmul.f32 0.70710677, %v1017_v21  ;;  %v1021_v31 = vadd.f32 %v232_v28, %v976_v23  ;;  %v416_v34 = vmul.f32 %v384_v29, %v288_v27 }
 0x129   :  { %v766_v32 = vpop.eup %765  ;;  %v236_v33 = vpop.f32.mrf.mxu0  ;;  %v385_v38 = vadd.f32 1.0, %v764_v25 }
 0x12a   :  { %779 = verf.f32 %v329_v30  ;;  %v330_v36 = vmul.f32 0.70710677, %v1021_v31  ;;  %v1025_v37 = vadd.f32 %v236_v33, %v974_v22  ;;  %556 = vmatprep.mubr.f32.mxu1 %v416_v34  ;;  %v386_v42 = vadd.f32 1.0, %v766_v32 }
 0x12b   :  { %v768_v39 = vpop.eup %767  ;;  %v238_v41 = vpop.f32.mrf.mxu0  ;;  %557 = vmatmul.mubr.f32.gmra.mxu1 %v415_v35  ;;  %v417_v55 = vmul.f32 %v385_v38, %v289_v44 }
 0x12c   :  { %781 = verf.f32 %v330_v36  ;;  %v331_v45 = vmul.f32 0.70710677, %v1025_v37  ;;  %v1031_v47 = vadd.f32 %v238_v41, %v976_v23  ;;  %v418_v51 = vmul.f32 %v386_v42, %v290_v40 }
 0x12d   :  { %v770_v48 = vpop.eup %769  ;;  %v242_v50 = vpop.f32.mrf.mxu0  ;;  %v387_v52 = vadd.f32 1.0, %v768_v39  ;;  %v298_v36 = vmul.f32 0.5, %v1021_v31  ;;  %v297_v40 = vmul.f32 0.5, %v1017_v21  ;;  %v299_v21 = vmul.f32 0.5, %v1025_v37 }
 0x12e   :  { %783 = verf.f32 %v331_v45  ;;  %v332_v54 = vmul.f32 0.70710677, %v1031_v47  ;;  %v1035_v46 = vadd.f32 %v242_v50, %v974_v22  ;;  %561 = vmatprep.mubr.f32.mxu1 %v418_v51  ;;  %v388_v60 = vadd.f32 1.0, %v770_v48 }
 0x12f   :  { %v772_v56 = vpop.eup %771  ;;  %v244_v59 = vpop.f32.mrf.mxu0  ;;  %562 = vmatmul.mubr.f32.gmra.mxu1 %v417_v55  ;;  %v419_v3 = vmul.f32 %v387_v52, %v291_v43  ;;  %v300_v55 = vmul.f32 0.5, %v1031_v47 }
 0x130   :  { %785 = verf.f32 %v332_v54  ;;  %v333_v61 = vmul.f32 0.70710677, %v1035_v46  ;;  %v1041_v62 = vadd.f32 %v244_v59, %v976_v23  ;;  %v420_v2 = vmul.f32 %v388_v60, %v292_v57 }
 0x131   :  { %v774_v63 = vpop.eup %773  ;;  %v248_v0 = vpop.f32.mrf.mxu0  ;;  %v389_v53 = vadd.f32 1.0, %v772_v56 }
 0x132   :  { %787 = verf.f32 %v333_v61  ;;  %v334_v4 = vmul.f32 0.70710677, %v1041_v62  ;;  %v1045_v49 = vadd.f32 %v248_v0, %v974_v22  ;;  %566 = vmatprep.mubr.f32.mxu1 %v420_v2  ;;  %v390_v9 = vadd.f32 1.0, %v774_v63 }
 0x133   :  { %v776_v5 = vpop.eup %775  ;;  %v250_v8 = vpop.f32.mrf.mxu0  ;;  %567 = vmatmul.mubr.f32.gmra.mxu1 %v419_v3  ;;  %v421_v19 = vmul.f32 %v389_v53, %v293_v10 }
 0x134   :  { %789 = verf.f32 %v334_v4  ;;  %v335_v11 = vmul.f32 0.70710677, %v1045_v49  ;;  %v1051_v12 = vadd.f32 %v250_v8, %v976_v23  ;;  %v422_v16 = vmul.f32 %v390_v9, %v294_v6 }
 0x135   :  { %v778_v13 = vpop.eup %777  ;;  %v254_v14 = vpop.f32.mrf.mxu0  ;;  %v391_v17 = vadd.f32 1.0, %v776_v5  ;;  %v302_v4 = vmul.f32 0.5, %v1041_v62  ;;  %v301_v6 = vmul.f32 0.5, %v1035_v46 }
 0x136   :  { %791 = verf.f32 %v335_v11  ;;  %v336_v18 = vmul.f32 0.70710677, %v1051_v12  ;;  %v1055_v1 = vadd.f32 %v254_v14, %v974_v22  ;;  %571 = vmatprep.mubr.f32.mxu1 %v422_v16  ;;  %v392_v26 = vadd.f32 1.0, %v778_v13 }
 0x137   :  { %v780_v20 = vpop.eup %779  ;;  %v256_v25 = vpop.f32.mrf.mxu0  ;;  %572 = vmatmul.mubr.f32.gmra.mxu1 %v421_v19  ;;  %v423_v33 = vmul.f32 %v391_v17, %v295_v58  ;;  %v303_v19 = vmul.f32 0.5, %v1045_v49  ;;  %v304_v46 = vmul.f32 0.5, %v1051_v12 }
 0x138   :  { %793 = verf.f32 %v336_v18  ;;  %v337_v27 = vmul.f32 0.70710677, %v1055_v1  ;;  %v1061_v28 = vadd.f32 %v256_v25, %v976_v23  ;;  %v424_v32 = vmul.f32 %v392_v26, %v296_v24 }
 0x139   :  { %v782_v29 = vpop.eup %781  ;;  %v260_v30 = vpop.f32.mrf.mxu0  ;;  %v393_v15 = vadd.f32 1.0, %v780_v20  ;;  %v305_v12 = vmul.f32 0.5, %v1055_v1 }
 0x13a   :  { %795 = verf.f32 %v337_v27  ;;  %v338_v34 = vmul.f32 0.70710677, %v1061_v28  ;;  %v1065_v7 = vadd.f32 %v260_v30, %v974_v22  ;;  %576 = vmatprep.mubr.f32.mxu1 %v424_v32  ;;  %v394_v39 = vadd.f32 1.0, %v782_v29 }
 0x13b   :  { %v784_v35 = vpop.eup %783  ;;  %v262_v38 = vpop.f32.mrf.mxu0  ;;  %577 = vmatmul.mubr.f32.gmra.mxu1 %v423_v33  ;;  %v425_v52 = vmul.f32 %v393_v15, %v297_v40  ;;  %v306_v27 = vmul.f32 0.5, %v1061_v28 }
 0x13c   :  { %797 = verf.f32 %v338_v34  ;;  %v339_v41 = vmul.f32 0.70710677, %v1065_v7  ;;  %v1071_v42 = vadd.f32 %v262_v38, %v976_v23  ;;  %v426_v48 = vmul.f32 %v394_v39, %v298_v36 }
 0x13d   :  { %v786_v44 = vpop.eup %785  ;;  %v266_v45 = vpop.f32.mrf.mxu0  ;;  %v395_v50 = vadd.f32 1.0, %v784_v35  ;;  %v307_v39 = vmul.f32 0.5, %v1065_v7 }
 0x13e   :  { %799 = verf.f32 %v339_v41  ;;  %v340_v51 = vmul.f32 0.70710677, %v1071_v42  ;;  %v1075_v31 = vadd.f32 %v266_v45, %v974_v22  ;;  %581 = vmatprep.mubr.f32.mxu1 %v426_v48  ;;  %v396_v43 = vadd.f32 1.0, %v786_v44 }
 0x13f   :  { %v788_v54 = vpop.eup %787  ;;  %v268_v56 = vpop.f32.mrf.mxu0  ;;  %582 = vmatmul.mubr.f32.gmra.mxu1 %v425_v52  ;;  %v427_v0 = vmul.f32 %v395_v50, %v299_v21 }
 0x140   :  { %801 = verf.f32 %v340_v51  ;;  %v341_v57 = vmul.f32 0.70710677, %v1075_v31  ;;  %v269_v59 = vadd.f32 %v268_v56, %v976_v23  ;;  %v428_v63 = vmul.f32 %v396_v43, %v300_v55 }
 0x141   :  { %v790_v60 = vpop.eup %789  ;;  %v272_v61 = vpop.f32.mrf.mxu0  ;;  %v397_v37 = vadd.f32 1.0, %v788_v54  ;;  %v309_v51 = vmul.f32 0.5, %v1075_v31 }
 0x142   :  { %803 = verf.f32 %v341_v57  ;;  %v342_v2 = vmul.f32 0.70710677, %v269_v59  ;;  %v1082_v3 = vadd.f32 %v272_v61, %v974_v22  ;;  %586 = vmatprep.mubr.f32.mxu1 %v428_v63  ;;  %v398_v5 = vadd.f32 1.0, %v790_v60 }
 0x143   :  { %v792_v47 = vpop.eup %791  ;;  %v274_v53 = vpop.f32.mrf.mxu0  ;;  %587 = vmatmul.mubr.f32.gmra.mxu1 %v427_v0  ;;  %v429_v62 = vmul.f32 %v397_v37, %v301_v6  ;;  %v310_v44 = vmul.f32 0.5, %v269_v59 }
 0x144   :  { %805 = verf.f32 %v342_v2  ;;  %v343_v8 = vmul.f32 0.70710677, %v1082_v3  ;;  %v275_v9 = vadd.f32 %v274_v53, %v976_v23  ;;  %v430_v13 = vmul.f32 %v398_v5, %v302_v4  ;;  %v1101_v4 = vld [vmem:[%s1129_s4] ss:$0 sm:$0xff]  ;;  %s909_s4 = smov [#allocation8]  }
 0x145   :  { %v794_v10 = vpop.eup %793  ;;  %v278_v11 = vpop.f32.mrf.mxu0  ;;  %v399_v14 = vadd.f32 1.0, %v792_v47  ;;  %v311_v43 = vmul.f32 0.5, %v1082_v3  ;;  %s648_s12 = sshll.u32 %s909_s4, 4  ;;  %s649_s12 = int_to_ptr.vmem [resolvable:$true] %s648_s12 }
 0x146   :  { %807 = verf.f32 %v343_v8  ;;  %v344_v16 = vmul.f32 0.70710677, %v275_v9  ;;  %v279_v17 = vadd.f32 %v278_v11, %v974_v22  ;;  %591 = vmatprep.mubr.f32.mxu1 %v430_v13  ;;  %v400_v58 = vadd.f32 1.0, %v794_v10  ;;  %s875_s13 = scalar_lea.vmem %s649_s12, 2048  ;;  %p880_p2 = scmp.lt.s32.totalorder %s649_s12, %s649_s12 }
 0x147   :  { %v796_v18 = vpop.eup %795  ;;  %v280_v20 = vpop.f32.mrf.mxu0  ;;  %592 = vmatmul.mubr.f32.gmra.mxu1 %v429_v62  ;;  %v431_v30 = vmul.f32 %v399_v14, %v303_v19  ;;  %v312_v54 = vmul.f32 0.5, %v275_v9  ;;  %p876_p1 = scmp.ne.s32.totalorder %s649_s12, %s875_s13  ;;  %p881_p3 = scmp.lt.s32.totalorder %s875_s13, %s875_s13 }
 0x148   :  { %809 = verf.f32 %v344_v16  ;;  %v345_v24 = vmul.f32 0.70710677, %v279_v17  ;;  %v281_v25 = vadd.f32 %v280_v20, %v976_v23  ;;  %v432_v29 = vmul.f32 %v400_v58, %v304_v46 }
 0x149   :  { %v798_v26 = vpop.eup %797  ;;  %v401_v33 = vadd.f32 1.0, %v796_v18  ;;  %v308_v23 = vmul.f32 0.5, %v1071_v42  ;;  %v313_v31 = vmul.f32 0.5, %v279_v17  ;;  %p882_p4 = por %p881_p3, %p880_p2 }
 0x14a   :  { %811 = verf.f32 %v345_v24  ;;  %v346_v22 = vmul.f32 0.70710677, %v281_v25  ;;  %v402_v32 = vadd.f32 1.0, %v798_v26  ;;  %596 = vmatprep.mubr.f32.mxu1 %v432_v29  ;;  %v314_v60 = vmul.f32 0.5, %v281_v25 }
 0x14b   :  { %v800_v49 = vpop.eup %799  ;;  %597 = vmatmul.mubr.f32.gmra.mxu1 %v431_v30  ;;  %v433_v35 = vmul.f32 %v401_v33, %v305_v12  ;;  %p883_p5 = pnand %p882_p4, %p876_p1 }
 0x14c   :  { %813 = verf.f32 %v346_v22  ;;  %v434_v34 = vmul.f32 %v402_v32, %v306_v27  ;;  %v403_v28 = vadd.f32 1.0, %v800_v49 }
 0x14d   :  { %v802_v15 = vpop.eup %801 }
 0x14e   :  { %601 = vmatprep.mubr.f32.mxu1 %v434_v34  ;;  %v404_v36 = vadd.f32 1.0, %v802_v15  ;;  %v435_v45 = vmul.f32 %v403_v28, %v307_v39 }
 0x14f   :  { %v804_v38 = vpop.eup %803  ;;  %602 = vmatmul.mubr.f32.gmra.mxu1 %v433_v35 }
 0x150   :  { %v436_v40 = vmul.f32 %v404_v36, %v308_v23  ;;  %v405_v48 = vadd.f32 1.0, %v804_v38 }
 0x151   :  { %v806_v41 = vpop.eup %805 }
 0x152   :  { %606 = vmatprep.mubr.f32.mxu1 %v436_v40  ;;  %v406_v1 = vadd.f32 1.0, %v806_v41  ;;  %v437_v21 = vmul.f32 %v405_v48, %v309_v51 }
 0x153   :  { %v808_v50 = vpop.eup %807  ;;  %607 = vmatmul.mubr.f32.gmra.mxu1 %v435_v45 }
 0x154   :  { %v438_v42 = vmul.f32 %v406_v1, %v310_v44  ;;  %v407_v56 = vadd.f32 1.0, %v808_v50 }
 0x155   :  { %v810_v52 = vpop.eup %809 }
 0x156   :  { %611 = vmatprep.mubr.f32.mxu1 %v438_v42  ;;  %v408_v55 = vadd.f32 1.0, %v810_v52  ;;  %v439_v61 = vmul.f32 %v407_v56, %v311_v43 }
 0x157   :  { %v812_v7 = vpop.eup %811  ;;  %612 = vmatmul.mubr.f32.gmra.mxu1 %v437_v21 }
 0x158   :  { %v440_v57 = vmul.f32 %v408_v55, %v312_v54  ;;  %v409_v0 = vadd.f32 1.0, %v812_v7 }
 0x159   :  { %v814_v59 = vpop.eup %813 }
 0x15a   :  { %616 = vmatprep.mubr.f32.mxu1 %v440_v57  ;;  %v410_v63 = vadd.f32 1.0, %v814_v59  ;;  %v441_v37 = vmul.f32 %v409_v0, %v313_v31 }
 0x15b   :  { %617 = vmatmul.mubr.f32.gmra.mxu1 %v439_v61 }
 0x15c   :  { %v442_v2 = vmul.f32 %v410_v63, %v314_v60 }
 0x15e   :  { %621 = vmatprep.mubr.f32.mxu1 %v442_v2 }
 0x15f   :  { %622 = vmatmul.mubr.f32.gmra.mxu1 %v441_v37 }
 0x1e3   :  { %v694_v47 = vpop.f32.mrf.mxu1 }
 0x1e5   :  { %v695_v3 = vpop.f32.mrf.mxu1 }
 0x1e6   :  { %v696_v53 = vadd.f32 %v695_v3, %v694_v47 }
 0x1e7   :  { %v697_v5 = vpop.f32.mrf.mxu1 }
 0x1e8   :  { %v549_v6 = vadd.f32 %v696_v53, %v1101_v4 }
 0x1e9   :  { %v698_v8 = vpop.f32.mrf.mxu1 }
 0x1ea   :  { %627 = vst [vmem:[#allocation8] sm:$0xff] %v549_v6  ;;  %v699_v9 = vadd.f32 %v698_v8, %v697_v5 }
 0x1eb   :  { %v700_v10 = vpop.f32.mrf.mxu1 }
 0x1ec   :  { %v554_v11 = vadd.f32 %v699_v9, %v1101_v4 }
 0x1ed   :  { %v701_v13 = vpop.f32.mrf.mxu1 }
 0x1ee   :  { %628 = vst [vmem:[#allocation8 + $0x8] sm:$0xff] %v554_v11  ;;  %v702_v14 = vadd.f32 %v701_v13, %v700_v10 }
 0x1ef   :  { %v703_v16 = vpop.f32.mrf.mxu1 }
 0x1f0   :  { %v559_v17 = vadd.f32 %v702_v14, %v1101_v4 }
 0x1f1   :  { %v704_v62 = vpop.f32.mrf.mxu1 }
 0x1f2   :  { %629 = vst [vmem:[#allocation8 + $0x10] sm:$0xff] %v559_v17  ;;  %v705_v18 = vadd.f32 %v704_v62, %v703_v16 }
 0x1f3   :  { %v706_v19 = vpop.f32.mrf.mxu1 }
 0x1f4   :  { %v564_v46 = vadd.f32 %v705_v18, %v1101_v4 }
 0x1f5   :  { %v707_v20 = vpop.f32.mrf.mxu1 }
 0x1f6   :  { %630 = vst [vmem:[#allocation8 + $0x18] sm:$0xff] %v564_v46  ;;  %v708_v58 = vadd.f32 %v707_v20, %v706_v19 }
 0x1f7   :  { %v709_v24 = vpop.f32.mrf.mxu1 }
 0x1f8   :  { %v569_v25 = vadd.f32 %v708_v58, %v1101_v4 }
 0x1f9   :  { %v710_v26 = vpop.f32.mrf.mxu1 }
 0x1fa   :  { %631 = vst [vmem:[#allocation8 + $0x20] sm:$0xff] %v569_v25  ;;  %v711_v27 = vadd.f32 %v710_v26, %v709_v24 }
 0x1fb   :  { %v712_v29 = vpop.f32.mrf.mxu1 }
 0x1fc   :  { %v574_v30 = vadd.f32 %v711_v27, %v1101_v4 }
 0x1fd   :  { %v713_v22 = vpop.f32.mrf.mxu1 }
 0x1fe   :  { %632 = vst [vmem:[#allocation8 + $0x28] sm:$0xff] %v574_v30  ;;  %v714_v32 = vadd.f32 %v713_v22, %v712_v29 }
 0x1ff   :  { %v715_v33 = vpop.f32.mrf.mxu1 }
 0x200   :  { %v579_v49 = vadd.f32 %v714_v32, %v1101_v4 }
 0x201   :  { %v716_v12 = vpop.f32.mrf.mxu1 }
 0x202   :  { %633 = vst [vmem:[#allocation8 + $0x30] sm:$0xff] %v579_v49  ;;  %v717_v34 = vadd.f32 %v716_v12, %v715_v33 }
 0x203   :  { %v718_v15 = vpop.f32.mrf.mxu1 }
 0x204   :  { %v584_v23 = vadd.f32 %v717_v34, %v1101_v4 }
 0x205   :  { %v719_v35 = vpop.f32.mrf.mxu1 }
 0x206   :  { %634 = vst [vmem:[#allocation8 + $0x38] sm:$0xff] %v584_v23  ;;  %v720_v36 = vadd.f32 %v719_v35, %v718_v15 }
 0x207   :  { %v721_v28 = vpop.f32.mrf.mxu1 }
 0x208   :  { %v589_v38 = vadd.f32 %v720_v36, %v1101_v4 }
 0x209   :  { %v722_v39 = vpop.f32.mrf.mxu1 }
 0x20a   :  { %635 = vst [vmem:[#allocation8 + $0x40] sm:$0xff] %v589_v38  ;;  %v723_v40 = vadd.f32 %v722_v39, %v721_v28 }
 0x20b   :  { %v724_v41 = vpop.f32.mrf.mxu1 }
 0x20c   :  { %v594_v44 = vadd.f32 %v723_v40, %v1101_v4 }
 0x20d   :  { %v725_v45 = vpop.f32.mrf.mxu1 }
 0x20e   :  { %636 = vst [vmem:[#allocation8 + $0x48] sm:$0xff] %v594_v44  ;;  %v726_v1 = vadd.f32 %v725_v45, %v724_v41 }
 0x20f   :  { %v727_v48 = vpop.f32.mrf.mxu1 }
 0x210   :  { %v599_v50 = vadd.f32 %v726_v1, %v1101_v4 }
 0x211   :  { %v728_v51 = vpop.f32.mrf.mxu1 }
 0x212   :  { %637 = vst [vmem:[#allocation8 + $0x50] sm:$0xff] %v599_v50  ;;  %v729_v42 = vadd.f32 %v728_v51, %v727_v48 }
 0x213   :  { %v730_v52 = vpop.f32.mrf.mxu1 }
 0x214   :  { %v604_v54 = vadd.f32 %v729_v42, %v1101_v4 }
 0x215   :  { %v731_v21 = vpop.f32.mrf.mxu1 }
 0x216   :  { %638 = vst [vmem:[#allocation8 + $0x58] sm:$0xff] %v604_v54  ;;  %v732_v55 = vadd.f32 %v731_v21, %v730_v52 }
 0x217   :  { %v733_v56 = vpop.f32.mrf.mxu1 }
 0x218   :  { %v609_v7 = vadd.f32 %v732_v55, %v1101_v4 }
 0x219   :  { %v734_v43 = vpop.f32.mrf.mxu1 }
 0x21a   :  { %639 = vst [vmem:[#allocation8 + $0x60] sm:$0xff] %v609_v7  ;;  %v735_v57 = vadd.f32 %v734_v43, %v733_v56 }
 0x21b   :  { %v736_v59 = vpop.f32.mrf.mxu1 }
 0x21c   :  { %v614_v60 = vadd.f32 %v735_v57, %v1101_v4 }
 0x21d   :  { %v737_v61 = vpop.f32.mrf.mxu1 }
 0x21e   :  { %640 = vst [vmem:[#allocation8 + $0x68] sm:$0xff] %v614_v60  ;;  %v738_v63 = vadd.f32 %v737_v61, %v736_v59 }
 0x21f   :  { %v739_v0 = vpop.f32.mrf.mxu1 }
 0x220   :  { %v619_v31 = vadd.f32 %v738_v63, %v1101_v4 }
 0x221   :  { %v740_v2 = vpop.f32.mrf.mxu1 }
 0x222   :  { %641 = vst [vmem:[#allocation8 + $0x70] sm:$0xff] %v619_v31  ;;  %v741_v37 = vadd.f32 %v740_v2, %v739_v0 }
 0x224   :  { %v624_v47 = vadd.f32 %v741_v37, %v1101_v4 }
 0x226   :  { %642 = vst [vmem:[#allocation8 + $0x78] sm:$0xff] %v624_v47 }
 0x227   :  { %886 = shalt.err (!%p883_p5)
}
 0x228   :  { %654 = dma.vmem_to_hbm [thread:$0]  %s649_s12, 2048, %s1130_s5, [#allocation4], %s905_s28, %s905_s28, %s906_s29  }
 0x229   :  { %899 = dma.done.wait [#allocation4], 2048  }
 0x22a   :  { %900 = vsyncadd [#allocation4], 4294965248 }
 0x22b   :  { %658 = vsyncpa [#allocation3], 1 }
 0x22c   :  { %659 = vsyncpa [#allocation6], 1 }
 0x22d   :  { %660 = vsyncpa [#allocation4], 1 }

</bundles_post_ra>
